<compile_context>
chip_gen: v6e
topology: v6e:2x2x1
jax: 0.10.0
libtpu: 0.0.40
codegen_flags: <defaults>
</compile_context>

<pallas_src>
import jax
import jax.numpy as jnp
from jax.experimental import pallas as pl
from jax.experimental.pallas import tpu as pltpu

EPS = 1e-5


def _round_up(x, m):
    return ((x + m - 1) // m) * m


# ----------------------------------------------------------------------------
# Kernel 1: candidate embeddings  cdd_emb = tanh(emb_ent)  (lane-dense view)
# ----------------------------------------------------------------------------
def _tanh_kernel(x_ref, o_ref):
    o_ref[...] = jnp.tanh(x_ref[...])


def tanh_embeddings(emb_ent, *, max_tile_rows=2048):
    n, r = emb_ent.shape
    total = n * r
    lanes = 128
    rows = pl.cdiv(total, lanes)
    tile = min(max_tile_rows, _round_up(rows, 8))
    rows_pad = _round_up(rows, tile)

    flat = emb_ent.reshape(-1)
    pad = rows_pad * lanes - total
    if pad:
        flat = jnp.concatenate([flat, jnp.zeros((pad,), emb_ent.dtype)])
    x2d = flat.reshape(rows_pad, lanes)

    out = pl.pallas_call(
        _tanh_kernel,
        out_shape=jax.ShapeDtypeStruct((rows_pad, lanes), emb_ent.dtype),
        grid=(rows_pad // tile,),
        in_specs=[pl.BlockSpec((tile, lanes), lambda i: (i, 0))],
        out_specs=pl.BlockSpec((tile, lanes), lambda i: (i, 0)),
        compiler_params=pltpu.CompilerParams(dimension_semantics=("parallel",)),
    )(x2d)
    return out.reshape(-1)[:total].reshape(n, r)


# ----------------------------------------------------------------------------
# Kernel 2: fused  bn0 -> conv1d(k=3,pad=1)+bn1 -> relu -> fc+bn2 -> relu
#           everything folded into two MXU matmuls (see _fold_params)
# ----------------------------------------------------------------------------
def _convtranse_kernel(z_ref,       # (TB, 2R)        gathered [ent | rel] embeds
                       wband_ref,   # (2R, CR_pad)    block-banded conv weight (bn0/bn1 folded)
                       bband_ref,   # (1, CR_pad)     folded conv/bn0/bn1 bias
                       wfc_ref,     # (CR_pad, Ro_pad) bn2-folded fc weight (lane-padded)
                       bfc_ref,     # (1, Ro_pad)     bn2-folded fc bias
                       out_ref):    # (TB, Ro_pad)
    z = z_ref[...].astype(jnp.float32)
    h = jnp.dot(z, wband_ref[...], preferred_element_type=jnp.float32) + bband_ref[...]
    h = jnp.maximum(h, 0.0)                                   # (TB, CR_pad), lane-dense
    x = jnp.dot(h, wfc_ref[...], preferred_element_type=jnp.float32) + bfc_ref[...]
    out_ref[...] = jnp.maximum(x, 0.0).astype(out_ref.dtype)


def _fold_params(params, R):
    """Fold bn0/bn1/bn2 + the k=3 pad=1 conv into two dense matmul weights."""
    C = params["conv_w"].shape[0]
    R_out = params["fc_w"].shape[0]
    CR = C * R
    CR_pad = _round_up(CR, 128)
    R_out_pad = _round_up(R_out, 128)

    g0, b0, m0, v0 = params["bn0"]
    s0 = g0 / jnp.sqrt(v0 + EPS)           # (2,)
    t0 = b0 - m0 * s0

    g1, b1, m1, v1 = params["bn1"]
    s1 = g1 / jnp.sqrt(v1 + EPS)           # (C,)
    t1 = b1 - m1 * s1

    g2, b2, m2, v2 = params["bn2"]
    s2 = g2 / jnp.sqrt(v2 + EPS)           # (R_out,)
    t2 = b2 - m2 * s2

    # bn1-folded conv taps / bias
    wf = params["conv_w"].astype(jnp.float32) * s1[:, None, None]     # (C, 2, 3)
    bconv = params["conv_b"] * s1 + t1                                # (C,)

    # Block-banded conv-as-matmul weight:
    #   W_band[ch*R + m, c*R + l] = s0[ch] * wf[c, ch, kt]   where m = l + kt - 1
    wband4 = jnp.zeros((2, R, C, R), jnp.float32)                     # [ch, m, c, l]
    for kt in range(3):
        A = wf[:, :, kt] * s0[None, :]                                # (C, 2), bn0 scale fold
        S = jnp.eye(R, k=1 - kt, dtype=jnp.float32)                   # S[m, l] = [m == l+kt-1]
        wband4 = wband4 + jnp.einsum("cq,ml->qmcl", A, S)
    wband = wband4.reshape(2 * R, CR)

    # bn0 shift fold -> per-position bias (boundary positions see fewer taps)
    l_idx = jnp.arange(R)
    valid = jnp.stack(
        [((l_idx + kt - 1 >= 0) & (l_idx + kt - 1 < R)).astype(jnp.float32)
         for kt in range(3)], axis=0)                                 # (3, R)
    bias0 = jnp.einsum("q,cqk,kl->cl", t0, wf, valid)                 # (C, R)
    bband = (bias0 + bconv[:, None]).reshape(1, CR)

    # bn2-folded fc
    wfc = (params["fc_w"].astype(jnp.float32) * s2[:, None]).T        # (CR, R_out)
    bfc = (params["fc_b"] * s2 + t2).reshape(1, R_out)

    # lane-dense padding: hidden C*R -> CR_pad, output R_out -> R_out_pad
    wband = jnp.pad(wband, ((0, 0), (0, CR_pad - CR)))
    bband = jnp.pad(bband, ((0, 0), (0, CR_pad - CR)))
    wfc = jnp.pad(wfc, ((0, CR_pad - CR), (0, R_out_pad - R_out)))
    bfc = jnp.pad(bfc, ((0, 0), (0, R_out_pad - R_out)))
    return (wband.astype(jnp.float32), bband.astype(jnp.float32),
            wfc.astype(jnp.float32), bfc.astype(jnp.float32))


def convtranse_forward(params, emb_ent, emb_rel, queries, *, max_batch_tile=1024):
    """Glue: gather + BN/conv folding + padding, then one fused Pallas call."""
    B = queries.shape[0]
    R = emb_ent.shape[1]
    R_out = params["fc_w"].shape[0]
    R_out_pad = _round_up(R_out, 128)

    # candidate embeddings (lane-dense elementwise kernel)
    cdd_emb = tanh_embeddings(emb_ent)

    # fold BN + conv band + fc once (plain JAX, trace-time)
    wband, bband, wfc, bfc = _fold_params(params, R)
    CR_pad = wband.shape[1]

    # batch tiling: large tiles, but >= 2 grid steps for non-trivial batches
    # so the "parallel" axis can shard across v7x's two TensorCores.
    B_pad = _round_up(B, 8)
    batch_tile = min(max_batch_tile, max(8, _round_up(pl.cdiv(B_pad, 2), 8)))
    B_pad = _round_up(B_pad, batch_tile)

    q = queries
    if B_pad != B:
        q = jnp.concatenate([q, jnp.zeros((B_pad - B, 2), dtype=q.dtype)], axis=0)

    # gather query entity / relation rows into one (B_pad, 2R) slab (glue)
    # TODO(synk): for very large B this gather could be fused in-kernel via
    # PrefetchScalarGridSpec scalar prefetch; skipped for small/medium B.
    z = jnp.concatenate(
        [jnp.take(emb_ent, q[:, 0], axis=0),
         jnp.take(emb_rel, q[:, 1], axis=0)], axis=-1).astype(jnp.float32)

    out = pl.pallas_call(
        _convtranse_kernel,
        out_shape=jax.ShapeDtypeStruct((B_pad, R_out_pad), jnp.float32),
        grid=(B_pad // batch_tile,),
        in_specs=[
            pl.BlockSpec((batch_tile, 2 * R), lambda i: (i, 0)),   # z
            pl.BlockSpec((2 * R, CR_pad), lambda i: (0, 0)),       # banded conv weight
            pl.BlockSpec((1, CR_pad), lambda i: (0, 0)),           # banded conv bias
            pl.BlockSpec((CR_pad, R_out_pad), lambda i: (0, 0)),   # folded fc weight
            pl.BlockSpec((1, R_out_pad), lambda i: (0, 0)),        # folded fc bias
        ],
        out_specs=pl.BlockSpec((batch_tile, R_out_pad), lambda i: (i, 0)),
        compiler_params=pltpu.CompilerParams(dimension_semantics=("parallel",)),
    )(z, wband, bband, wfc, bfc)

    return out[:B, :R_out], cdd_emb


# ----------------------------------------------------------------------------
# Pure-JAX reference (mirrors the PyTorch forward, eval-mode BN, dropout p=0)
# ----------------------------------------------------------------------------
def reference_forward(params, emb_ent, emb_rel, queries):
    def bn(x, g, b, m, v, axis):
        shp = [1] * x.ndim
        shp[axis] = -1
        return ((x - m.reshape(shp)) / jnp.sqrt(v.reshape(shp) + EPS)
                * g.reshape(shp) + b.reshape(shp))

    B = queries.shape[0]
    R = emb_ent.shape[1]
    cdd = jnp.tanh(emb_ent)
    xe = emb_ent[queries[:, 0]][:, None, :]
    xr = emb_rel[queries[:, 1]][:, None, :]
    x = jnp.concatenate([xe, xr], axis=1)            # (B, 2, R)  NCW
    x = bn(x, *params["bn0"], axis=1)
    xpad = jnp.pad(x, ((0, 0), (0, 0), (1, 1)))
    xs = jnp.stack([xpad[:, :, k:k + R] for k in range(3)], axis=-1)  # (B,2,R,3)
    x = jnp.einsum("bclk,ock->bol", xs, params["conv_w"]) \
        + params["conv_b"][None, :, None]
    x = bn(x, *params["bn1"], axis=1)
    x = jnp.maximum(x, 0.0)
    x = x.reshape(B, -1)                             # channel-major flatten
    x = x @ params["fc_w"].T + params["fc_b"]
    x = bn(x, *params["bn2"], axis=1)
    return jnp.maximum(x, 0.0), cdd


# ----------------------------------------------------------------------------
if __name__ == "__main__":
    # Small shapes consistent with the module:
    #   rank=32, channels=16, kernel_size=3, num_ent=64, num_rel=16, batch=13
    #   (batch deliberately NOT a multiple of 8 to exercise the padding path)
    RANK, CHANNELS, NUM_ENT, NUM_REL, BATCH = 32, 16, 64, 16, 13

    key = jax.random.PRNGKey(0)
    ks = jax.random.split(key, 8)

    emb_ent = jax.random.normal(ks[0], (NUM_ENT, RANK), jnp.float32)
    emb_rel = jax.random.normal(ks[1], (NUM_REL, RANK), jnp.float32)
    queries = jnp.stack(
        [jax.random.randint(ks[2], (BATCH,), 0, NUM_ENT),
         jax.random.randint(ks[3], (BATCH,), 0, NUM_REL)], axis=1).astype(jnp.int32)

    def bn_params(k, n):
        a, b, c, d = jax.random.split(k, 4)
        gamma = 1.0 + 0.1 * jax.random.normal(a, (n,), jnp.float32)
        beta = 0.1 * jax.random.normal(b, (n,), jnp.float32)
        mean = 0.1 * jax.random.normal(c, (n,), jnp.float32)
        var = 1.0 + 0.1 * jnp.abs(jax.random.normal(d, (n,), jnp.float32))
        return (gamma, beta, mean, var)

    kc, kcb, kf, kfb = jax.random.split(ks[4], 4)
    params = {
        "conv_w": 0.2 * jax.random.normal(kc, (CHANNELS, 2, 3), jnp.float32),
        "conv_b": 0.1 * jax.random.normal(kcb, (CHANNELS,), jnp.float32),
        "fc_w": 0.05 * jax.random.normal(kf, (RANK, RANK * CHANNELS), jnp.float32),
        "fc_b": 0.1 * jax.random.normal(kfb, (RANK,), jnp.float32),
        "bn0": bn_params(ks[5], 2),
        "bn1": bn_params(ks[6], CHANNELS),
        "bn2": bn_params(ks[7], RANK),
    }
    # TODO(synk): dropout is identity (p=0) and BatchNorm uses running stats
    # (inference mode); training-mode batch statistics are not computed.

    qry_emb, cdd_emb = jax.block_until_ready(
        convtranse_forward(params, emb_ent, emb_rel, queries))

    qry_ref, cdd_ref = reference_forward(params, emb_ent, emb_rel, queries)

    assert qry_emb.shape == (BATCH, RANK) and cdd_emb.shape == (NUM_ENT, RANK)
    assert jnp.allclose(cdd_emb, cdd_ref, atol=1e-3, rtol=1e-3)
    assert jnp.allclose(qry_emb, qry_ref, atol=1e-3, rtol=1e-3)

    print("KERNEL_OK")
</pallas_src>

<mosaic_0001>
module attributes {stable_mosaic.version = 11 : i64} {
  func.func @_tanh_kernel(%arg0: i32, %arg1: memref<16x128xf32, #tpu.memory_space<vmem>>, %arg2: memref<16x128xf32, #tpu.memory_space<vmem>>) attributes {dimension_semantics = [#tpu.dimension_semantics<parallel>], iteration_bounds = array<i64: 1>, scalar_prefetch = 0 : i64, scratch_operands = 0 : i64, tpu.core_type = #tpu.core_type<tc>, window_params = [{transform_indices = @transform_0, window_bounds = array<i64: 16, 128>}, {transform_indices = @transform_1, window_bounds = array<i64: 16, 128>}]} {
    %c0 = arith.constant 0 : index
    %c0_0 = arith.constant 0 : index
    %0 = vector.load %arg1[%c0, %c0_0] : memref<16x128xf32, #tpu.memory_space<vmem>>, vector<16x128xf32>
    %1 = math.tanh %0 : vector<16x128xf32>
    %c0_1 = arith.constant 0 : index
    %c0_2 = arith.constant 0 : index
    %2 = vector.load %arg2[%c0_1, %c0_2] : memref<16x128xf32, #tpu.memory_space<vmem>>, vector<16x128xf32>
    tpu.vector_store %arg2[%c0_1, %c0_2], %1 {strides = array<i32>} : memref<16x128xf32, #tpu.memory_space<vmem>>, vector<16x128xf32>,
    return
  }
  func.func @transform_0(%arg0: i32) -> (i32, i32) {
    %c0_i32 = arith.constant 0 : i32
    %c0_i32_0 = arith.constant 0 : i32
    return %arg0, %c0_i32 : i32, i32
  }
  func.func @transform_1(%arg0: i32) -> (i32, i32) {
    %c0_i32 = arith.constant 0 : i32
    %c0_i32_0 = arith.constant 0 : i32
    return %arg0, %c0_i32 : i32, i32
  }
}

</mosaic_0001>

<bundles_post_ra>
// kernel: tpu_custom_call.1
= control target key start
LH: loop header
LB: loop body
LE: loop exit
PB: predicated region body
PF: predicated region fallthrough
CT: control target
= control target key end

     0   :  { %6 = vsyncpa [#allocation3], 0  ;;  %s118_s0 = inlined_call_operand.hbm [shape: f32[16,128], index: 0, kind: input, shape index: {}]   ;;  %s119_s1 = inlined_call_operand.hbm [shape: f32[16,128], index: 1, kind: output, shape index: {}]  }
   0x1   :  { %7 = vsyncpa [#allocation4], 0  ;;  %s98_s6 = smov [#allocation2]  }
   0x2   :  { %s13_s7 = sshll.u32 %s98_s6, 4  ;;  %s14_s7 = int_to_ptr.vmem [resolvable:$true] %s13_s7 }
   0x3   :  { %s62_s8 = scalar_lea.vmem %s14_s7, 256  ;;  %p67_p1 = scmp.lt.s32.totalorder %s14_s7, %s14_s7 }
   0x4   :  { %p63_p0 = scmp.ne.s32.totalorder %s14_s7, %s62_s8  ;;  %p68_p2 = scmp.lt.s32.totalorder %s62_s8, %s62_s8 }
   0x6   :  { %p69_p3 = por %p68_p2, %p67_p1 }
   0x8   :  { %p70_p4 = pnand %p69_p3, %p63_p0 }
   0xa   :  { %73 = shalt.err (!%p70_p4)
}
   0xb   :  { %s99_s9 = smov 128   ;;  %s100_s10 = smov 8  }
   0xc   :  { %19 = dma.hbm_to_vmem [thread:$0]  %s118_s0, 256, %s14_s7, [#allocation3], %s99_s9, %s99_s9, %s100_s10  }
   0xd   :  { %94 = dma.done.wait [#allocation3], 256  }
   0xe   :  { %95 = vsyncadd [#allocation3], 4294967040  ;;  %v23_v0 = vld [vmem:[#allocation2] sm:$0xff]  ;;  %v24_v1 = vld [vmem:[#allocation2 + $0x8] sm:$0xff]  ;;  %s101_s13 = smov [#allocation5]  }
   0xf   :  { %50 = vtanh.f32 %v23_v0  ;;  %s34_s14 = sshll.u32 %s101_s13, 4  ;;  %s35_s14 = int_to_ptr.vmem [resolvable:$true] %s34_s14 }
  0x10   :  { %52 = vtanh.f32 %v24_v1  ;;  %s74_s15 = scalar_lea.vmem %s35_s14, 256  ;;  %p79_p6 = scmp.lt.s32.totalorder %s35_s14, %s35_s14 }
  0x11   :  { %p75_p5 = scmp.ne.s32.totalorder %s35_s14, %s74_s15  ;;  %p80_p7 = scmp.lt.s32.totalorder %s74_s15, %s74_s15 }
  0x13   :  { %p81_p8 = por %p80_p7, %p79_p6 }
  0x15   :  { %p82_p9 = pnand %p81_p8, %p75_p5 }
  0x1c   :  { %v51_v2 = vpop.eup %50 }
  0x1d   :  { %v53_v3 = vpop.eup %52  ;;  %27 = vst [vmem:[#allocation5] sm:$0xff] %v51_v2 }
  0x1e   :  { %28 = vst [vmem:[#allocation5 + $0x8] sm:$0xff] %v53_v3 }
  0x1f   :  { %85 = shalt.err (!%p82_p9)
}
  0x20   :  { %40 = dma.vmem_to_hbm [thread:$0]  %s35_s14, 256, %s119_s1, [#allocation4], %s99_s9, %s99_s9, %s100_s10  }
  0x21   :  { %96 = dma.done.wait [#allocation4], 256  }
  0x22   :  { %97 = vsyncadd [#allocation4], 4294967040 }
  0x23   :  { %44 = vsyncpa [#allocation3], 1 }
  0x24   :  { %45 = vsyncpa [#allocation4], 1 }

</bundles_post_ra>
